<compile_context>
chip_gen: v7x
topology: tpu7x:2x2x1
jax: 0.10.0
libtpu: 0.0.40
codegen_flags: <defaults>
</compile_context>

<pallas_src>
import jax
import jax.numpy as jnp
from jax.experimental import pallas as pl
from jax.experimental.pallas import tpu as pltpu


def _lowrank_conv_kernel(d1_ref, w34_ref, scale_ref, x_ref, o_ref):
    """One batch sample per grid step.

    d1_ref    : SMEM (C,)          channel factor d1
    w34_ref   : SMEM (KH*KW,)      flattened spatial factor d3 (x) d4
    scale_ref : SMEM (O,)          per-output-channel scale rank*d2
    x_ref     : VMEM (1, C, Hp, Wp) zero-padded activations for this sample
    o_ref     : VMEM (1, O, Ho, Wo) output in final NCHW layout
    """
    C = x_ref.shape[1]
    Hp, Wp = x_ref.shape[2], x_ref.shape[3]
    O = o_ref.shape[1]
    Ho, Wo = o_ref.shape[2], o_ref.shape[3]
    KH, KW = Hp - Ho + 1, Wp - Wo + 1

    # 1) Channel contraction: s[i', j'] = sum_c d1[c] * x[c, i', j']  (VPU).
    s = None
    for c in range(C):
        term = d1_ref[c] * x_ref[0, c]
        s = term if s is None else s + term

    # 2) Separable KHxKW accumulation over statically shifted slices of s
    #    (XLU shifts + VPU fma; tap weights are SMEM scalars d3[kh]*d4[kw]).
    acc = None
    for kh in range(KH):
        for kw in range(KW):
            tap = w34_ref[kh * KW + kw] * s[kh:kh + Ho, kw:kw + Wo]
            acc = tap if acc is None else acc + tap

    # 3) Per-output-channel scale (rank*d2[o]); store directly in final layout.
    for o in range(O):
        o_ref[0, o] = (scale_ref[o] * acc).astype(o_ref.dtype)


def low_rank_conv2d(x, dim1, dim2, dim3, dim4, rank, padding):
    """Forward of LowRankConv2D.

    x    : (N, C, H, W)
    dim1 : (C,)  dim2: (O,)  dim3: (KH,)  dim4: (KW,)  -- the [0]-indexed
           module parameters (forward() only ever reads index 0).
    """
    N, C, H, W = x.shape
    O = dim2.shape[0]
    KH = dim3.shape[0]
    KW = dim4.shape[0]
    assert dim1.shape[0] == C
    p = padding
    Hp, Wp = H + 2 * p, W + 2 * p
    Ho, Wo = Hp - KH + 1, Wp - KW + 1

    # Zero padding is the only pre-kernel data movement (single XLA pad pass).
    x_pad = jnp.pad(x.astype(jnp.float32), ((0, 0), (0, 0), (p, p), (p, p)))

    # Rank-1 weight factors flattened into three tiny SMEM scalar vectors.
    d1_f = dim1.astype(jnp.float32)                                       # (C,)
    w34 = (dim3[:, None] * dim4[None, :]).reshape(KH * KW).astype(jnp.float32)
    # forward() adds the same [0]-indexed product `rank` times == rank * product.
    scale = (rank * dim2).astype(jnp.float32)                             # (O,)

    out = pl.pallas_call(
        _lowrank_conv_kernel,
        out_shape=jax.ShapeDtypeStruct((N, O, Ho, Wo), jnp.float32),
        grid_spec=pltpu.PrefetchScalarGridSpec(
            num_scalar_prefetch=3,          # d1, d3(x)d4, rank*d2 -> SMEM
            grid=(N,),
            in_specs=[
                pl.BlockSpec((1, C, Hp, Wp),
                             lambda n, _d1, _w34, _sc: (n, 0, 0, 0)),
            ],
            out_specs=pl.BlockSpec((1, O, Ho, Wo),
                                   lambda n, _d1, _w34, _sc: (n, 0, 0, 0)),
        ),
        compiler_params=pltpu.CompilerParams(
            dimension_semantics=("parallel",),
        ),
    )(d1_f, w34, scale, x_pad)
    return out


if __name__ == "__main__":
    # Small, module-consistent shapes.
    N, C, O = 2, 4, 8
    H = W = 16
    kernel_size = (3, 3)
    padding = 1
    rank = 2

    key = jax.random.PRNGKey(0)
    key, kx, k1, k2, k3, k4 = jax.random.split(key, 6)
    x = jax.random.normal(kx, (N, C, H, W), jnp.float32)
    # Module parameters; only the [0] entry of each ParameterList is used.
    dim1 = jax.random.uniform(k1, (C,), jnp.float32)
    dim2 = jax.random.uniform(k2, (O,), jnp.float32)
    dim3 = jax.random.uniform(k3, (kernel_size[0],), jnp.float32)
    dim4 = jax.random.uniform(k4, (kernel_size[1],), jnp.float32)

    out = low_rank_conv2d(x, dim1, dim2, dim3, dim4, rank, padding)
    out = jax.block_until_ready(out)

    # Pure-JAX reference: materialize the weights exactly as the module's
    # forward() does, then run the stride-1 conv (same as F.conv2d).
    weights = None
    for _ in range(rank):
        product = (dim2[:, None, None, None]
                   * dim1[None, :, None, None]
                   * dim3[None, None, :, None]
                   * dim4[None, None, None, :])
        weights = product if weights is None else weights + product
    ref = jax.lax.conv_general_dilated(
        x, weights,
        window_strides=(1, 1),
        padding=[(padding, padding), (padding, padding)],
        dimension_numbers=("NCHW", "OIHW", "NCHW"),
    )
    assert out.shape == ref.shape, (out.shape, ref.shape)
    assert jnp.allclose(out, ref, atol=1e-4, rtol=1e-4), \
        float(jnp.max(jnp.abs(out - ref)))

    print("KERNEL_OK")
</pallas_src>

<mosaic_0001>
module attributes {stable_mosaic.version = 11 : i64} {
  func.func @_lowrank_conv_kernel(%arg0: i32, %arg1: memref<4xf32, #tpu.memory_space<smem>>, %arg2: memref<9xf32, #tpu.memory_space<smem>>, %arg3: memref<8xf32, #tpu.memory_space<smem>>, %arg4: memref<1x4x18x18xf32, #tpu.memory_space<vmem>>, %arg5: memref<1x8x16x16xf32, #tpu.memory_space<vmem>>) attributes {dimension_semantics = [#tpu.dimension_semantics<parallel>], iteration_bounds = array<i64: 2>, scalar_prefetch = 3 : i64, scratch_operands = 0 : i64, tpu.core_type = #tpu.core_type<tc>, window_params = [{transform_indices = @transform_0, window_bounds = array<i64: 1, 4, 18, 18>}, {transform_indices = @transform_1, window_bounds = array<i64: 1, 8, 16, 16>}]} {
    %c0 = arith.constant 0 : index
    %0 = memref.load %arg1[%c0] : memref<4xf32, #tpu.memory_space<smem>>
    %c0_0 = arith.constant 0 : index
    %c0_1 = arith.constant 0 : index
    %c0_2 = arith.constant 0 : index
    %c0_3 = arith.constant 0 : index
    %1 = vector.load %arg4[%c0_0, %c0_1, %c0_2, %c0_3] : memref<1x4x18x18xf32, #tpu.memory_space<vmem>>, vector<1x1x18x18xf32>
    %2 = vector.shape_cast %1 : vector<1x1x18x18xf32> to vector<18x18xf32>
    %3 = vector.broadcast %0 : f32 to vector<18x18xf32>
    %4 = arith.mulf %3, %2 : vector<18x18xf32>
    %c1 = arith.constant 1 : index
    %5 = memref.load %arg1[%c1] : memref<4xf32, #tpu.memory_space<smem>>
    %c0_4 = arith.constant 0 : index
    %c1_5 = arith.constant 1 : index
    %c0_6 = arith.constant 0 : index
    %c0_7 = arith.constant 0 : index
    %6 = vector.load %arg4[%c0_4, %c1_5, %c0_6, %c0_7] : memref<1x4x18x18xf32, #tpu.memory_space<vmem>>, vector<1x1x18x18xf32>
    %7 = vector.shape_cast %6 : vector<1x1x18x18xf32> to vector<18x18xf32>
    %8 = vector.broadcast %5 : f32 to vector<18x18xf32>
    %9 = arith.mulf %8, %7 : vector<18x18xf32>
    %10 = arith.addf %4, %9 : vector<18x18xf32>
    %c2 = arith.constant 2 : index
    %11 = memref.load %arg1[%c2] : memref<4xf32, #tpu.memory_space<smem>>
    %c0_8 = arith.constant 0 : index
    %c2_9 = arith.constant 2 : index
    %c0_10 = arith.constant 0 : index
    %c0_11 = arith.constant 0 : index
    %12 = vector.load %arg4[%c0_8, %c2_9, %c0_10, %c0_11] : memref<1x4x18x18xf32, #tpu.memory_space<vmem>>, vector<1x1x18x18xf32>
    %13 = vector.shape_cast %12 : vector<1x1x18x18xf32> to vector<18x18xf32>
    %14 = vector.broadcast %11 : f32 to vector<18x18xf32>
    %15 = arith.mulf %14, %13 : vector<18x18xf32>
    %16 = arith.addf %10, %15 : vector<18x18xf32>
    %c3 = arith.constant 3 : index
    %17 = memref.load %arg1[%c3] : memref<4xf32, #tpu.memory_space<smem>>
    %c0_12 = arith.constant 0 : index
    %c3_13 = arith.constant 3 : index
    %c0_14 = arith.constant 0 : index
    %c0_15 = arith.constant 0 : index
    %18 = vector.load %arg4[%c0_12, %c3_13, %c0_14, %c0_15] : memref<1x4x18x18xf32, #tpu.memory_space<vmem>>, vector<1x1x18x18xf32>
    %19 = vector.shape_cast %18 : vector<1x1x18x18xf32> to vector<18x18xf32>
    %20 = vector.broadcast %17 : f32 to vector<18x18xf32>
    %21 = arith.mulf %20, %19 : vector<18x18xf32>
    %22 = arith.addf %16, %21 : vector<18x18xf32>
    %c0_16 = arith.constant 0 : index
    %23 = memref.load %arg2[%c0_16] : memref<9xf32, #tpu.memory_space<smem>>
    %24 = vector.extract_strided_slice %22 {offsets = [0, 0], sizes = [16, 16], strides = [1, 1]} : vector<18x18xf32> to vector<16x16xf32>
    %25 = vector.broadcast %23 : f32 to vector<16x16xf32>
    %26 = arith.mulf %25, %24 : vector<16x16xf32>
    %c1_17 = arith.constant 1 : index
    %27 = memref.load %arg2[%c1_17] : memref<9xf32, #tpu.memory_space<smem>>
    %28 = vector.extract_strided_slice %22 {offsets = [0, 1], sizes = [16, 16], strides = [1, 1]} : vector<18x18xf32> to vector<16x16xf32>
    %29 = vector.broadcast %27 : f32 to vector<16x16xf32>
    %30 = arith.mulf %29, %28 : vector<16x16xf32>
    %31 = arith.addf %26, %30 : vector<16x16xf32>
    %c2_18 = arith.constant 2 : index
    %32 = memref.load %arg2[%c2_18] : memref<9xf32, #tpu.memory_space<smem>>
    %33 = vector.extract_strided_slice %22 {offsets = [0, 2], sizes = [16, 16], strides = [1, 1]} : vector<18x18xf32> to vector<16x16xf32>
    %34 = vector.broadcast %32 : f32 to vector<16x16xf32>
    %35 = arith.mulf %34, %33 : vector<16x16xf32>
    %36 = arith.addf %31, %35 : vector<16x16xf32>
    %c3_19 = arith.constant 3 : index
    %37 = memref.load %arg2[%c3_19] : memref<9xf32, #tpu.memory_space<smem>>
    %38 = vector.extract_strided_slice %22 {offsets = [1, 0], sizes = [16, 16], strides = [1, 1]} : vector<18x18xf32> to vector<16x16xf32>
    %39 = vector.broadcast %37 : f32 to vector<16x16xf32>
    %40 = arith.mulf %39, %38 : vector<16x16xf32>
    %41 = arith.addf %36, %40 : vector<16x16xf32>
    %c4 = arith.constant 4 : index
    %42 = memref.load %arg2[%c4] : memref<9xf32, #tpu.memory_space<smem>>
    %43 = vector.extract_strided_slice %22 {offsets = [1, 1], sizes = [16, 16], strides = [1, 1]} : vector<18x18xf32> to vector<16x16xf32>
    %44 = vector.broadcast %42 : f32 to vector<16x16xf32>
    %45 = arith.mulf %44, %43 : vector<16x16xf32>
    %46 = arith.addf %41, %45 : vector<16x16xf32>
    %c5 = arith.constant 5 : index
    %47 = memref.load %arg2[%c5] : memref<9xf32, #tpu.memory_space<smem>>
    %48 = vector.extract_strided_slice %22 {offsets = [1, 2], sizes = [16, 16], strides = [1, 1]} : vector<18x18xf32> to vector<16x16xf32>
    %49 = vector.broadcast %47 : f32 to vector<16x16xf32>
    %50 = arith.mulf %49, %48 : vector<16x16xf32>
    %51 = arith.addf %46, %50 : vector<16x16xf32>
    %c6 = arith.constant 6 : index
    %52 = memref.load %arg2[%c6] : memref<9xf32, #tpu.memory_space<smem>>
    %53 = vector.extract_strided_slice %22 {offsets = [2, 0], sizes = [16, 16], strides = [1, 1]} : vector<18x18xf32> to vector<16x16xf32>
    %54 = vector.broadcast %52 : f32 to vector<16x16xf32>
    %55 = arith.mulf %54, %53 : vector<16x16xf32>
    %56 = arith.addf %51, %55 : vector<16x16xf32>
    %c7 = arith.constant 7 : index
    %57 = memref.load %arg2[%c7] : memref<9xf32, #tpu.memory_space<smem>>
    %58 = vector.extract_strided_slice %22 {offsets = [2, 1], sizes = [16, 16], strides = [1, 1]} : vector<18x18xf32> to vector<16x16xf32>
    %59 = vector.broadcast %57 : f32 to vector<16x16xf32>
    %60 = arith.mulf %59, %58 : vector<16x16xf32>
    %61 = arith.addf %56, %60 : vector<16x16xf32>
    %c8 = arith.constant 8 : index
    %62 = memref.load %arg2[%c8] : memref<9xf32, #tpu.memory_space<smem>>
    %63 = vector.extract_strided_slice %22 {offsets = [2, 2], sizes = [16, 16], strides = [1, 1]} : vector<18x18xf32> to vector<16x16xf32>
    %64 = vector.broadcast %62 : f32 to vector<16x16xf32>
    %65 = arith.mulf %64, %63 : vector<16x16xf32>
    %66 = arith.addf %61, %65 : vector<16x16xf32>
    %c0_20 = arith.constant 0 : index
    %67 = memref.load %arg3[%c0_20] : memref<8xf32, #tpu.memory_space<smem>>
    %68 = vector.broadcast %67 : f32 to vector<16x16xf32>
    %69 = arith.mulf %68, %66 : vector<16x16xf32>
    %c0_21 = arith.constant 0 : index
    %c0_22 = arith.constant 0 : index
    %c0_23 = arith.constant 0 : index
    %c0_24 = arith.constant 0 : index
    %70 = vector.load %arg5[%c0_21, %c0_22, %c0_23, %c0_24] : memref<1x8x16x16xf32, #tpu.memory_space<vmem>>, vector<1x1x16x16xf32>
    %71 = vector.shape_cast %70 : vector<1x1x16x16xf32> to vector<16x16xf32>
    %72 = vector.shape_cast %69 : vector<16x16xf32> to vector<1x1x16x16xf32>
    tpu.vector_store %arg5[%c0_21, %c0_22, %c0_23, %c0_24], %72 {strides = array<i32>} : memref<1x8x16x16xf32, #tpu.memory_space<vmem>>, vector<1x1x16x16xf32>,
    %c1_25 = arith.constant 1 : index
    %73 = memref.load %arg3[%c1_25] : memref<8xf32, #tpu.memory_space<smem>>
    %74 = vector.broadcast %73 : f32 to vector<16x16xf32>
    %75 = arith.mulf %74, %66 : vector<16x16xf32>
    %c0_26 = arith.constant 0 : index
    %c1_27 = arith.constant 1 : index
    %c0_28 = arith.constant 0 : index
    %c0_29 = arith.constant 0 : index
    %76 = vector.load %arg5[%c0_26, %c1_27, %c0_28, %c0_29] : memref<1x8x16x16xf32, #tpu.memory_space<vmem>>, vector<1x1x16x16xf32>
    %77 = vector.shape_cast %76 : vector<1x1x16x16xf32> to vector<16x16xf32>
    %78 = vector.shape_cast %75 : vector<16x16xf32> to vector<1x1x16x16xf32>
    tpu.vector_store %arg5[%c0_26, %c1_27, %c0_28, %c0_29], %78 {strides = array<i32>} : memref<1x8x16x16xf32, #tpu.memory_space<vmem>>, vector<1x1x16x16xf32>,
    %c2_30 = arith.constant 2 : index
    %79 = memref.load %arg3[%c2_30] : memref<8xf32, #tpu.memory_space<smem>>
    %80 = vector.broadcast %79 : f32 to vector<16x16xf32>
    %81 = arith.mulf %80, %66 : vector<16x16xf32>
    %c0_31 = arith.constant 0 : index
    %c2_32 = arith.constant 2 : index
    %c0_33 = arith.constant 0 : index
    %c0_34 = arith.constant 0 : index
    %82 = vector.load %arg5[%c0_31, %c2_32, %c0_33, %c0_34] : memref<1x8x16x16xf32, #tpu.memory_space<vmem>>, vector<1x1x16x16xf32>
    %83 = vector.shape_cast %82 : vector<1x1x16x16xf32> to vector<16x16xf32>
    %84 = vector.shape_cast %81 : vector<16x16xf32> to vector<1x1x16x16xf32>
    tpu.vector_store %arg5[%c0_31, %c2_32, %c0_33, %c0_34], %84 {strides = array<i32>} : memref<1x8x16x16xf32, #tpu.memory_space<vmem>>, vector<1x1x16x16xf32>,
    %c3_35 = arith.constant 3 : index
    %85 = memref.load %arg3[%c3_35] : memref<8xf32, #tpu.memory_space<smem>>
    %86 = vector.broadcast %85 : f32 to vector<16x16xf32>
    %87 = arith.mulf %86, %66 : vector<16x16xf32>
    %c0_36 = arith.constant 0 : index
    %c3_37 = arith.constant 3 : index
    %c0_38 = arith.constant 0 : index
    %c0_39 = arith.constant 0 : index
    %88 = vector.load %arg5[%c0_36, %c3_37, %c0_38, %c0_39] : memref<1x8x16x16xf32, #tpu.memory_space<vmem>>, vector<1x1x16x16xf32>
    %89 = vector.shape_cast %88 : vector<1x1x16x16xf32> to vector<16x16xf32>
    %90 = vector.shape_cast %87 : vector<16x16xf32> to vector<1x1x16x16xf32>
    tpu.vector_store %arg5[%c0_36, %c3_37, %c0_38, %c0_39], %90 {strides = array<i32>} : memref<1x8x16x16xf32, #tpu.memory_space<vmem>>, vector<1x1x16x16xf32>,
    %c4_40 = arith.constant 4 : index
    %91 = memref.load %arg3[%c4_40] : memref<8xf32, #tpu.memory_space<smem>>
    %92 = vector.broadcast %91 : f32 to vector<16x16xf32>
    %93 = arith.mulf %92, %66 : vector<16x16xf32>
    %c0_41 = arith.constant 0 : index
    %c4_42 = arith.constant 4 : index
    %c0_43 = arith.constant 0 : index
    %c0_44 = arith.constant 0 : index
    %94 = vector.load %arg5[%c0_41, %c4_42, %c0_43, %c0_44] : memref<1x8x16x16xf32, #tpu.memory_space<vmem>>, vector<1x1x16x16xf32>
    %95 = vector.shape_cast %94 : vector<1x1x16x16xf32> to vector<16x16xf32>
    %96 = vector.shape_cast %93 : vector<16x16xf32> to vector<1x1x16x16xf32>
    tpu.vector_store %arg5[%c0_41, %c4_42, %c0_43, %c0_44], %96 {strides = array<i32>} : memref<1x8x16x16xf32, #tpu.memory_space<vmem>>, vector<1x1x16x16xf32>,
    %c5_45 = arith.constant 5 : index
    %97 = memref.load %arg3[%c5_45] : memref<8xf32, #tpu.memory_space<smem>>
    %98 = vector.broadcast %97 : f32 to vector<16x16xf32>
    %99 = arith.mulf %98, %66 : vector<16x16xf32>
    %c0_46 = arith.constant 0 : index
    %c5_47 = arith.constant 5 : index
    %c0_48 = arith.constant 0 : index
    %c0_49 = arith.constant 0 : index
    %100 = vector.load %arg5[%c0_46, %c5_47, %c0_48, %c0_49] : memref<1x8x16x16xf32, #tpu.memory_space<vmem>>, vector<1x1x16x16xf32>
    %101 = vector.shape_cast %100 : vector<1x1x16x16xf32> to vector<16x16xf32>
    %102 = vector.shape_cast %99 : vector<16x16xf32> to vector<1x1x16x16xf32>
    tpu.vector_store %arg5[%c0_46, %c5_47, %c0_48, %c0_49], %102 {strides = array<i32>} : memref<1x8x16x16xf32, #tpu.memory_space<vmem>>, vector<1x1x16x16xf32>,
    %c6_50 = arith.constant 6 : index
    %103 = memref.load %arg3[%c6_50] : memref<8xf32, #tpu.memory_space<smem>>
    %104 = vector.broadcast %103 : f32 to vector<16x16xf32>
    %105 = arith.mulf %104, %66 : vector<16x16xf32>
    %c0_51 = arith.constant 0 : index
    %c6_52 = arith.constant 6 : index
    %c0_53 = arith.constant 0 : index
    %c0_54 = arith.constant 0 : index
    %106 = vector.load %arg5[%c0_51, %c6_52, %c0_53, %c0_54] : memref<1x8x16x16xf32, #tpu.memory_space<vmem>>, vector<1x1x16x16xf32>
    %107 = vector.shape_cast %106 : vector<1x1x16x16xf32> to vector<16x16xf32>
    %108 = vector.shape_cast %105 : vector<16x16xf32> to vector<1x1x16x16xf32>
    tpu.vector_store %arg5[%c0_51, %c6_52, %c0_53, %c0_54], %108 {strides = array<i32>} : memref<1x8x16x16xf32, #tpu.memory_space<vmem>>, vector<1x1x16x16xf32>,
    %c7_55 = arith.constant 7 : index
    %109 = memref.load %arg3[%c7_55] : memref<8xf32, #tpu.memory_space<smem>>
    %110 = vector.broadcast %109 : f32 to vector<16x16xf32>
    %111 = arith.mulf %110, %66 : vector<16x16xf32>
    %c0_56 = arith.constant 0 : index
    %c7_57 = arith.constant 7 : index
    %c0_58 = arith.constant 0 : index
    %c0_59 = arith.constant 0 : index
    %112 = vector.load %arg5[%c0_56, %c7_57, %c0_58, %c0_59] : memref<1x8x16x16xf32, #tpu.memory_space<vmem>>, vector<1x1x16x16xf32>
    %113 = vector.shape_cast %112 : vector<1x1x16x16xf32> to vector<16x16xf32>
    %114 = vector.shape_cast %111 : vector<16x16xf32> to vector<1x1x16x16xf32>
    tpu.vector_store %arg5[%c0_56, %c7_57, %c0_58, %c0_59], %114 {strides = array<i32>} : memref<1x8x16x16xf32, #tpu.memory_space<vmem>>, vector<1x1x16x16xf32>,
    return
  }
  func.func @transform_0(%arg0: i32, %arg1: memref<4xf32, #tpu.memory_space<smem>>, %arg2: memref<9xf32, #tpu.memory_space<smem>>, %arg3: memref<8xf32, #tpu.memory_space<smem>>) -> (i32, i32, i32, i32) {
    %c0_i32 = arith.constant 0 : i32
    %c0_i32_0 = arith.constant 0 : i32
    %c0_i32_1 = arith.constant 0 : i32
    %c0_i32_2 = arith.constant 0 : i32
    return %arg0, %c0_i32, %c0_i32_0, %c0_i32_1 : i32, i32, i32, i32
  }
  func.func @transform_1(%arg0: i32, %arg1: memref<4xf32, #tpu.memory_space<smem>>, %arg2: memref<9xf32, #tpu.memory_space<smem>>, %arg3: memref<8xf32, #tpu.memory_space<smem>>) -> (i32, i32, i32, i32) {
    %c0_i32 = arith.constant 0 : i32
    %c0_i32_0 = arith.constant 0 : i32
    %c0_i32_1 = arith.constant 0 : i32
    %c0_i32_2 = arith.constant 0 : i32
    return %arg0, %c0_i32, %c0_i32_0, %c0_i32_1 : i32, i32, i32, i32
  }
}

</mosaic_0001>

<bundles_post_ra>
// kernel: tpu_custom_call.1
= control target key start
LH: loop header
LB: loop body
LE: loop exit
PB: predicated region body
PF: predicated region fallthrough
CT: control target
= control target key end

     0   :  { %s937_s0 = inlined_call_operand.vmem [shape: f32[4], index: 0, kind: input, shape index: {}]   ;;  %s938_s3 = inlined_call_operand.vmem [shape: f32[2,4,18,18], index: 3, kind: input, shape index: {}]   ;;  %s939_s4 = inlined_call_operand.hbm [shape: f32[2,8,16,16], index: 4, kind: output, shape index: {}]   ;;  %s940_s1 = inlined_call_operand.vmem [shape: f32[9], index: 1, kind: input, shape index: {}]   ;;  %s941_s2 = inlined_call_operand.vmem [shape: f32[8], index: 2, kind: input, shape index: {}]  }
   0x1   :  { %s9_s17 = sshll.u32 %s937_s0, 4  ;;  %s13_s20 = sshll.u32 %s940_s1, 4  ;;  %s10_s17 = int_to_ptr.vmem [resolvable:$true] %s9_s17  ;;  %s14_s20 = int_to_ptr.vmem [resolvable:$true] %s13_s20 }
   0x2   :  { %s560_s21 = scalar_lea.vmem %s10_s17, 16  ;;  %p565_p1 = scmp.lt.s32.totalorder %s10_s17, %s10_s17 }
   0x3   :  { %p561_p0 = scmp.ne.s32.totalorder %s10_s17, %s560_s21  ;;  %p566_p2 = scmp.lt.s32.totalorder %s560_s21, %s560_s21 }
   0x5   :  { %p567_p3 = por %p566_p2, %p565_p1 }
   0x7   :  { %p568_p4 = pnand %p567_p3, %p561_p0 }
   0x9   :  { %571 = shalt.err (!%p568_p4)  }
   0xa   :  { %s662_s22 = smov [#allocation3]   ;;  %s572_s23 = scalar_lea.vmem %s14_s20, 16 }
   0xb   :  { %12 = dma.vmem_to_smem %s10_s17, 16, %s662_s22, [#allocation2] }
   0xc   :  { %p573_p5 = scmp.ne.s32.totalorder %s14_s20, %s572_s23  ;;  %p577_p6 = scmp.lt.s32.totalorder %s14_s20, %s14_s20 }
   0xd   :  { %p578_p7 = scmp.lt.s32.totalorder %s572_s23, %s572_s23 }
   0xf   :  { %p579_p8 = por %p578_p7, %p577_p6 }
  0x11   :  { %p580_p9 = pnand %p579_p8, %p573_p5 }
  0x13   :  { %583 = shalt.err (!%p580_p9)  }
  0x14   :  { %s663_s0 = smov [#allocation4]   ;;  %s17_s25 = sshll.u32 %s941_s2, 4  ;;  %s18_s25 = int_to_ptr.vmem [resolvable:$true] %s17_s25 }
  0x15   :  { %16 = dma.vmem_to_smem %s14_s20, 16, %s663_s0, [#allocation2] }
  0x16   :  { %s584_s26 = scalar_lea.vmem %s18_s25, 16  ;;  %p589_p11 = scmp.lt.s32.totalorder %s18_s25, %s18_s25 }
  0x17   :  { %p585_p10 = scmp.ne.s32.totalorder %s18_s25, %s584_s26  ;;  %p590_p12 = scmp.lt.s32.totalorder %s584_s26, %s584_s26 }
  0x19   :  { %p591_p13 = por %p590_p12, %p589_p11 }
  0x1b   :  { %p592_p0 = pnand %p591_p13, %p585_p10 }
  0x1d   :  { %595 = shalt.err (!%p592_p0)  }
  0x1e   :  { %s664_s27 = smov [#allocation5]  }
  0x1f   :  { %20 = dma.vmem_to_smem %s18_s25, 16, %s664_s27, [#allocation2] }
  0x20   :  { %640 = dma.done.wait [#allocation2], 48 }
  0x21   :  { %641 = vsyncadd [#allocation2], 4294967248 }
  0x22   :  { %22 = sfence }
  0x23   :  { %23 = vsyncpa [#allocation7], 0 }
  0x24   :  { %25 = vsyncpa [#allocation7 + $0x1], 0  ;;  %s704_s28 = smov 0   ;;  %s706_s29 = smov 0  }
  0x25   :  { %s708_s2 = smov 0   ;;  %s710_s30 = smov 0  }
  0x26 LB: > { %s725_s5 = sadd.s32 4294967295, %s660_s30   ;;  %s460_s6 = sadd.s32 4294967294, %s660_s30   ;;  %s660_s30 = sphi %s710_s30, %s947_s30   ;;  %s656_s2 = sphi %s708_s2, %s946_s2   ;;  %s652_s29 = sphi %s706_s29, %s945_s29   ;;  %s648_s28 = sphi %s704_s28, %s944_s28  }
  0x27   : > { %s729_s7 = sadd.s32 1, %s660_s30   ;;  %s64_s8 = sadd.s32 1, %s656_s2 }
  0x28   : > { %s61_s9 = ssub.s32 %s660_s30, %s729_s7  ;;  %p74_p1 = scmp.ne.s32.totalorder %s656_s2, %s652_s29 }
  0x29   : > { %p62_p2 = scmp.eq.s32.totalorder %s61_s9, 0  ;;  %p75_p3 = scmp.eq.s32.totalorder %s725_s5, 1 }
  0x2a   : > { %p80_p4 = scmp.ne.s32.totalorder %s652_s29, %s648_s28  ;;  %p81_p5 = scmp.eq.s32.totalorder %s460_s6, 1 }
  0x2b   : > { %s740_s10 = scalar_select %p62_p2, %s656_s2, %s64_s8  }
  0x2c   : > { %p742_p6 = por %p75_p3, %p74_p1  ;;  %p746_p7 = por %p81_p5, %p80_p4 }
  0x2d   : > { %p463_p8 = scmp.ge.s32.totalorder %s660_s30, 1  ;;  %p107_p9 = scmp.lt.s32.totalorder %s660_s30, 3 }
  0x2f   : > { %p108_p10 = pnand %p463_p8, %p107_p9 }
  0x30   : > { %p127_p11 = scmp.lt.s32.totalorder (!%p108_p10), %s725_s5, 1  ;;  %s132_s13 = sld [smem:[#allocation3]] (!%p108_p10)  ;;  %vm216_vm0 = vcmask (!%p108_p10), 1046528   ;;  %vm276_vm1 = vcmask (!%p108_p10), 1045504   ;;  %vm332_vm2 = vcmask (!%p108_p10), 130048  }
  0x31   : > { %111 = sbr.rel (%p108_p10) target bundleno = 233 (0xe9), region = 24  ;;  %s466_s14 = sld [smem:[#allocation3 + $0x1]] (!%p108_p10) }
  0x32   : > { %s470_s15 = sld [smem:[#allocation3 + $0x2]] (!%p108_p10)  ;;  %s474_s17 = sld [smem:[#allocation3 + $0x3]] (!%p108_p10) }
  0x33   : > { %s754_s19 = sld [smem:[#allocation4 + $0x2]] (!%p108_p10)  ;;  %s756_s20 = sld [smem:[#allocation4 + $0x1]] (!%p108_p10) }
  0x34   : > { %s761_s0 = sld [smem:[#allocation4 + $0x4]] (!%p108_p10)  ;;  %s763_s1 = sld [smem:[#allocation4 + $0x5]] (!%p108_p10) }
  0x35   : > { %s484_s24 = sld [smem:[#allocation4 + $0x7]] (!%p108_p10)  ;;  %s767_s25 = sld [smem:[#allocation4 + $0x8]] (!%p108_p10) }
  0x36   : > { %v136_v0 = vstv (!%p108_p10), %s132_s13  ;;  %s778_s26 = sld [smem:[#allocation4 + $0x3]] (!%p108_p10)  ;;  %s665_s27 = smov (!%p108_p10), 126  }
  0x37   : > { %v145_v4 = vstv (!%p108_p10), %s466_s14  ;;  %s666_s6 = smov (!%p108_p10), 127   ;;  %s787_s8 = sld [smem:[#allocation4 + $0x6]] (!%p108_p10) }
  0x38   : > { %s128_s16 = scalar_select %p127_p11, %s725_s5, 1  ;;  %v157_v11 = vstv %s470_s15  ;;  %v169_v17 = vstv %s474_s17 }
  0x39   : > { %v195_v29 = vstv %s754_s19  ;;  %v181_v30 = vstv %s756_s20  ;;  %s176_s9 = sld [smem:[#allocation4]]  ;;  %s826_s14 = sld [smem:[#allocation5 + $0x1]] }
  0x3a   : > { %s513_s18 = smul.u32 96, %s128_s16  ;;  %v227_v35 = vstv %s761_s0  ;;  %v248_v37 = vstv %s763_s1  ;;  %s824_s13 = sld [smem:[#allocation5]] }
  0x3b   : > { %v287_v46 = vstv %s484_s24  ;;  %v308_v56 = vstv %s767_s25  ;;  %s828_s15 = sld [smem:[#allocation5 + $0x2]]  ;;  %s830_s16 = sld [smem:[#allocation5 + $0x3]] }
  0x3c   : > { %s131_s23 = scalar_lea.vmem %s938_s3, %s513_s18  ;;  %s832_s17 = sld [smem:[#allocation5 + $0x4]] }
  0x3d   : > { %v133_v1 = vld [vmem:[%s131_s23] sm:$0xff]  ;;  %v134_v2 = vld [vmem:[%s131_s23 + $0x8] sm:$0xff]  ;;  %v467_v3 = vld [vmem:[%s131_s23 + $0x18] sm:$0xff]  ;;  %s834_s18 = sld [smem:[#allocation5 + $0x5]]  ;;  %s836_s19 = sld [smem:[#allocation5 + $0x6]] }
  0x3e   : > { %v137_v5 = vmul.f32 %v136_v0, %v133_v1  ;;  %v138_v6 = vmul.f32 %v136_v0, %v134_v2  ;;  %v468_v7 = vld [vmem:[%s131_s23 + $0x20] sm:$0xff]  ;;  %v146_v8 = vmul.f32 %v467_v3, %v145_v4  ;;  %v471_v9 = vld [vmem:[%s131_s23 + $0x30] sm:$0xff]  ;;  %v472_v10 = vld [vmem:[%s131_s23 + $0x38] sm:$0xff]  ;;  %v209_v3 = vstv %s778_s26  ;;  %s838_s20 = sld [smem:[#allocation5 + $0x7]]  ;;  %s124_s21 = sand.u32 1, %s652_s29  }
  0x3f   : > { %v147_v12 = vmul.f32 %v468_v7, %v145_v4  ;;  %v158_v13 = vmul.f32 %v471_v9, %v157_v11  ;;  %v159_v14 = vmul.f32 %v472_v10, %v157_v11  ;;  %v475_v15 = vld [vmem:[%s131_s23 + $0x48] sm:$0xff]  ;;  %v476_v16 = vld [vmem:[%s131_s23 + $0x50] sm:$0xff]  ;;  %v473_v22 = vld [vmem:[%s131_s23 + $0x40] sm:$0x3]  ;;  %s464_s22 = sshll.u32 %s124_s21, 7  ;;  %s896_s26 = scalar_lea.sflag [#allocation7], %s124_s21 }
  0x40   : > { %v135_v18 = vld [vmem:[%s131_s23 + $0x10] sm:$0x3]  ;;  %v149_v19 = vadd.f32 %v146_v8, %v137_v5  ;;  %v170_v20 = vmul.f32 %v475_v15, %v169_v17  ;;  %v469_v21 = vld [vmem:[%s131_s23 + $0x28] sm:$0x3]  ;;  %v477_v23 = vld [vmem:[%s131_s23 + $0x58] sm:$0x3]  ;;  %v171_v25 = vmul.f32 %v476_v16, %v169_v17  ;;  %v160_v31 = vmul.f32 %v473_v22, %v157_v11 }
  0x41   : > { %v150_v24 = vadd.f32 %v147_v12, %v138_v6  ;;  %v139_v26 = vmul.f32 %v136_v0, %v135_v18  ;;  %v148_v27 = vmul.f32 %v469_v21, %v145_v4  ;;  %v172_v34 = vmul.f32 %v477_v23, %v169_v17  ;;  %s512_s23 = sshll.u32 %s725_s5, 11  ;;  %s852_s0 = scalar_lea.vmem [#allocation6], %s464_s22 }
  0x42   : > { %v161_v28 = vadd.f32 %v158_v13, %v149_v19  ;;  %v269_v11 = vstv %s787_s8  ;;  %s398_s1 = sshll.u32 %s852_s0, 4  ;;  %s866_s25 = scalar_lea.hbm %s939_s4, %s512_s23  ;;  %s868_s1 = int_to_ptr.vmem [resolvable:$true] %s398_s1 }
  0x43   : > { %v162_v32 = vadd.f32 %v159_v14, %v150_v24  ;;  %v151_v33 = vadd.f32 %v148_v27, %v139_v26 }
  0x44   : > { %v770_v36 = vadd.f32 %v170_v20, %v161_v28 }
  0x45   : > { %v773_v38 = vadd.f32 %v171_v25, %v162_v32  ;;  %v163_v39 = vadd.f32 %v160_v31, %v151_v33  ;;  %v177_v33 = vstv %s176_s9 }
  0x46   : > { %v196_v40 = vmul.f32 %v195_v29, %v770_v36  ;;  %v182_v41 = vmul.f32 %v181_v30, %v770_v36  ;;  %v228_v42 = vmul.f32 %v227_v35, %v770_v36  ;;  %v249_v45 = vmul.f32 %v248_v37, %v770_v36 }
  0x47   : > { %v175_v43 = vadd.f32 %v172_v34, %v163_v39  ;;  %v229_v44 = vmul.f32 %v227_v35, %v773_v38  ;;  %v197_v47 = vmul.f32 %v195_v29, %v773_v38  ;;  %v183_v48 = vmul.f32 %v181_v30, %v773_v38 }
  0x48   : > { %200 = vrot.lane.b32.xlu1 %v196_v40, %s665_s27  ;;  %186 = vrot.lane.b32.xlu0 %v182_v41, %s666_s6  ;;  %v250_v49 = vmul.f32 %v248_v37, %v773_v38  ;;  %v234_v52 = vrot.slane %v228_v42, 1  ;;  %v289_v54 = vmul.f32 %v287_v46, %v773_v38  ;;  %v255_v59 = vrot.slane %v249_v45, 1 }
  0x49   : > { %v230_v50 = vmul.f32 %v227_v35, %v175_v43  ;;  %v235_v51 = vrot.slane %v229_v44, 1  ;;  %v251_v53 = vmul.f32 %v248_v37, %v175_v43  ;;  %v290_v55 = vmul.f32 %v287_v46, %v175_v43 }
  0x4a   : > { %v256_v58 = vrot.slane %v250_v49, 1  ;;  %v288_v60 = vmul.f32 %v287_v46, %v770_v36  ;;  %v295_v0 = vrot.slane %v289_v54, 2  ;;  %v310_v2 = vmul.f32 %v308_v56, %v773_v38 }
  0x4b   : > { %v237_v57 = vrot.slane %v230_v50, 1  ;;  %v258_v61 = vrot.slane %v251_v53, 1  ;;  %v236_v63 = vsel %vm216_vm0, %v234_v52, %v235_v51  ;;  %v297_v1 = vrot.slane %v290_v55, 2 }
  0x4c   : > { %202 = vrot.lane.b32.xlu1 %v197_v47, %s665_s27  ;;  %188 = vrot.lane.b32.xlu0 %v183_v48, %s666_s6  ;;  %v257_v4 = vsel %vm216_vm0, %v255_v59, %v256_v58  ;;  %v294_v5 = vrot.slane %v288_v60, 2  ;;  %v311_v6 = vmul.f32 %v308_v56, %v175_v43  ;;  %v211_v7 = vmul.f32 %v209_v3, %v773_v38 }
  0x4d   : > { %v238_v62 = vsel %vm216_vm0, %v235_v51, %v237_v57  ;;  %v259_v8 = vsel %vm216_vm0, %v256_v58, %v258_v61  ;;  %v212_v9 = vmul.f32 %v209_v3, %v175_v43  ;;  %v210_v10 = vmul.f32 %v209_v3, %v770_v36 }
  0x4e   : > { %v309_v12 = vmul.f32 %v308_v56, %v770_v36  ;;  %v218_v13 = vrot.slane %v211_v7, 1  ;;  %v271_v14 = vmul.f32 %v269_v11, %v773_v38  ;;  %v272_v15 = vmul.f32 %v269_v11, %v175_v43 }
  0x4f   : > { %v220_v16 = vrot.slane %v212_v9, 1  ;;  %v217_v17 = vrot.slane %v210_v10, 1  ;;  %v270_v18 = vmul.f32 %v269_v11, %v770_v36  ;;  %v316_v19 = vrot.slane %v310_v2, 2 }
  0x50   : > { %241 = vrot.lane.b32.xlu1 %v238_v62, %s666_s6  ;;  %239 = vrot.lane.b32.xlu0 %v236_v63, %s666_s6  ;;  %v278_v20 = vrot.slane %v271_v14, 2  ;;  %v280_v21 = vrot.slane %v272_v15, 2  ;;  %v298_v22 = vsel %vm276_vm1, %v295_v0, %v297_v1  ;;  %v296_v26 = vsel %vm276_vm1, %v294_v5, %v295_v0 }
  0x51   : > { %v221_v23 = vsel %vm216_vm0, %v218_v13, %v220_v16  ;;  %v219_v24 = vsel %vm216_vm0, %v217_v17, %v218_v13  ;;  %v277_v25 = vrot.slane %v270_v18, 2  ;;  %v318_v27 = vrot.slane %v311_v6, 2 }
  0x52   : > { %v315_v28 = vrot.slane %v309_v12, 2  ;;  %v281_v29 = vsel %vm276_vm1, %v278_v20, %v280_v21  ;;  %v178_v34 = vmul.f32 %v177_v33, %v770_v36  ;;  %v179_v40 = vmul.f32 %v177_v33, %v773_v38 }
  0x53   : > { %v279_v30 = vsel %vm276_vm1, %v277_v25, %v278_v20  ;;  %v319_v31 = vsel %vm276_vm1, %v316_v19, %v318_v27  ;;  %v329_v60 = vstv %s824_s13  ;;  %v336_v61 = vstv %s826_s14 }
  0x54   : > { %262 = vrot.lane.b32.xlu1 %v259_v8, %s665_s27  ;;  %260 = vrot.lane.b32.xlu0 %v257_v4, %s665_s27  ;;  %v317_v32 = vsel %vm276_vm1, %v315_v28, %v316_v19  ;;  %v343_v62 = vstv %s828_s15  ;;  %v350_v63 = vstv %s830_s16 }
  0x55   : > { %v357_v0 = vstv %s832_s17  ;;  %v364_v1 = vstv %s834_s18  ;;  %v371_v4 = vstv %s836_s19  ;;  %v378_v5 = vstv %s838_s20 }
  0x58   : > { %301 = vrot.lane.b32.xlu1 %v298_v22, %s666_s6  ;;  %299 = vrot.lane.b32.xlu0 %v296_v26, %s666_s6  ;;  %s667_s6 = smov [#allocation6]  }
  0x59   : > { %s600_s8 = sshll.u32 %s667_s6, 4  ;;  %s601_s8 = int_to_ptr.vmem [resolvable:$false] %s600_s8 }
  0x5a   : > { %s602_s9 = scalar_lea.vmem %s601_s8, 4096  ;;  %p603_p1 = scmp.lt.s32.totalorder %s868_s1, %s601_s8 }
  0x5c   : > { %322 = vrot.lane.b32.xlu1 %v319_v31, %s665_s27  ;;  %320 = vrot.lane.b32.xlu0 %v317_v32, %s665_s27  ;;  %s596_s27 = scalar_lea.vmem %s868_s1, 2048 }
  0x5d   : > { %p597_p12 = scmp.ne.s32.totalorder %s868_s1, %s596_s27  ;;  %p604_p2 = scmp.lt.s32.totalorder %s602_s9, %s596_s27 }
  0x5f   : > { %p598_p13 = pnand %p597_p12, %p742_p6  ;;  %p605_p3 = por %p604_p2, %p603_p1 }
  0x61   : > { %p599_p0 = pneg %p598_p13 }
  0x63   : > { %p606_p4 = pnand %p605_p3, %p599_p0 }
  0xba   : > { %v201_v35 = vpop.permute.xlu1 %200  ;;  %v187_v37 = vpop.permute.xlu0 %186 }
  0xbb   : > { %v192_v39 = vadd.f32 %v187_v37, %v178_v34 }
  0xbd   : > { %v206_v41 = vadd.f32 %v201_v35, %v192_v39 }
  0xbe   : > { %v203_v42 = vpop.permute.xlu1 %202  ;;  %v189_v43 = vpop.permute.xlu0 %188 }
  0xbf   : > { %v193_v44 = vadd.f32 %v189_v43, %v179_v40  ;;  %v224_v45 = vadd.f32 %v219_v24, %v206_v41 }
  0xc1   : > { %v207_v46 = vadd.f32 %v203_v42, %v193_v44 }
  0xc2   : > { %v242_v47 = vpop.permute.xlu1 %241  ;;  %v240_v48 = vpop.permute.xlu0 %239 }
  0xc3   : > { %v225_v49 = vadd.f32 %v221_v23, %v207_v46  ;;  %v245_v50 = vadd.f32 %v240_v48, %v224_v45 }
  0xc5   : > { %v246_v36 = vadd.f32 %v242_v47, %v225_v49 }
  0xc6   : > { %v263_v38 = vpop.permute.xlu1 %262  ;;  %v261_v51 = vpop.permute.xlu0 %260 }
  0xc7   : > { %v267_v52 = vadd.f32 %v263_v38, %v246_v36  ;;  %v266_v53 = vadd.f32 %v261_v51, %v245_v50 }
  0xc9   : > { %v285_v54 = vadd.f32 %v281_v29, %v267_v52  ;;  %v284_v55 = vadd.f32 %v279_v30, %v266_v53 }
  0xca   : > { %v302_v56 = vpop.permute.xlu1 %301  ;;  %v300_v57 = vpop.permute.xlu0 %299 }
  0xcb   : > { %v306_v58 = vadd.f32 %v302_v56, %v285_v54  ;;  %v305_v59 = vadd.f32 %v300_v57, %v284_v55 }
  0xce   : > { %v323_v2 = vpop.permute.xlu1 %322  ;;  %v321_v3 = vpop.permute.xlu0 %320 }
  0xcf   : > { %v327_v6 = vadd.f32 %v323_v2, %v306_v58  ;;  %v326_v7 = vadd.f32 %v321_v3, %v305_v59 }
  0xd1   : > { %v331_v8 = vmul.f32 %v329_v60, %v327_v6  ;;  %v338_v9 = vmul.f32 %v336_v61, %v327_v6  ;;  %v345_v10 = vmul.f32 %v343_v62, %v327_v6  ;;  %v352_v11 = vmul.f32 %v350_v63, %v327_v6 }
  0xd2   : > { %v359_v12 = vmul.f32 %v357_v0, %v327_v6  ;;  %v366_v13 = vmul.f32 %v364_v1, %v327_v6  ;;  %v373_v14 = vmul.f32 %v371_v4, %v327_v6  ;;  %v380_v15 = vmul.f32 %v378_v5, %v327_v6 }
  0xd3   : > { %334 = vst.msk [vmem:[%s852_s0 + $0x8] sm:$0xff] %vm332_vm2, %v331_v8  ;;  %488 = vst.msk [vmem:[%s852_s0 + $0x18] sm:$0xff] %vm332_vm2, %v338_v9  ;;  %v330_v16 = vmul.f32 %v329_v60, %v326_v7  ;;  %v337_v17 = vmul.f32 %v336_v61, %v326_v7  ;;  %v344_v18 = vmul.f32 %v343_v62, %v326_v7 }
  0xd4   : > { %491 = vst.msk [vmem:[%s852_s0 + $0x28] sm:$0xff] %vm332_vm2, %v345_v10  ;;  %494 = vst.msk [vmem:[%s852_s0 + $0x38] sm:$0xff] %vm332_vm2, %v352_v11  ;;  %v351_v19 = vmul.f32 %v350_v63, %v326_v7  ;;  %v358_v20 = vmul.f32 %v357_v0, %v326_v7  ;;  %v365_v21 = vmul.f32 %v364_v1, %v326_v7 }
  0xd5   : > { %497 = vst.msk [vmem:[%s852_s0 + $0x48] sm:$0xff] %vm332_vm2, %v359_v12  ;;  %500 = vst.msk [vmem:[%s852_s0 + $0x58] sm:$0xff] %vm332_vm2, %v366_v13  ;;  %v372_v22 = vmul.f32 %v371_v4, %v326_v7  ;;  %v379_v23 = vmul.f32 %v378_v5, %v326_v7 }
  0xd6   : > { %503 = vst.msk [vmem:[%s852_s0 + $0x68] sm:$0xff] %vm332_vm2, %v373_v14  ;;  %506 = vst.msk [vmem:[%s852_s0 + $0x78] sm:$0xff] %vm332_vm2, %v380_v15 }
  0xd7   : > { %333 = vst.msk [vmem:[%s852_s0] sm:$0xff] %vm332_vm2, %v330_v16  ;;  %487 = vst.msk [vmem:[%s852_s0 + $0x10] sm:$0xff] %vm332_vm2, %v337_v17 }
  0xd8   : > { %490 = vst.msk [vmem:[%s852_s0 + $0x20] sm:$0xff] %vm332_vm2, %v344_v18  ;;  %493 = vst.msk [vmem:[%s852_s0 + $0x30] sm:$0xff] %vm332_vm2, %v351_v19 }
  0xd9   : > { %496 = vst.msk [vmem:[%s852_s0 + $0x40] sm:$0xff] %vm332_vm2, %v358_v20  ;;  %499 = vst.msk [vmem:[%s852_s0 + $0x50] sm:$0xff] %vm332_vm2, %v365_v21 }
  0xda   : > { %502 = vst.msk [vmem:[%s852_s0 + $0x60] sm:$0xff] %vm332_vm2, %v372_v22  ;;  %505 = vst.msk [vmem:[%s852_s0 + $0x70] sm:$0xff] %vm332_vm2, %v379_v23 }
  0xdb   : > { %609 = shalt.err (!%p606_p4)
}
  0xdc   : > { %s610_s13 = scalar_lea.hbm %s866_s25, 2048  ;;  %s614_s16 = scalar_lea.hbm %s939_s4, 4096 }
  0xdd   : > { %p611_p5 = scmp.ne.s32.totalorder %s866_s25, %s610_s13  ;;  %p615_p10 = scmp.lt.u32.totalorder %s866_s25, %s939_s4 }
  0xde   : > { %p616_p11 = scmp.lt.u32.totalorder %s614_s16, %s610_s13  ;;  %p618_p13 = scmp.lt.u32.totalorder %s610_s13, %s866_s25 }
  0xdf   : > { %p612_p8 = pnand %p611_p5, %p742_p6 }
  0xe0   : > { %p617_p12 = por %p616_p11, %p615_p10 }
  0xe1   : > { %p613_p9 = pneg %p612_p8 }
  0xe2   : > { %p619_p0 = por %p618_p13, %p617_p12 }
  0xe4   : > { %p620_p1 = pnand %p619_p0, %p613_p9 }
  0xe6   : > { %623 = shalt.err (!%p620_p1)
}
  0xe7   : > { %s668_s19 = smov 128   ;;  %s669_s20 = smov 8  }
  0xe8   : > { %514 = dma.vmem_to_hbm [thread:$0]  (%p742_p6), %s868_s1, 2048, %s866_s25, %s896_s26, %s668_s19, %s668_s19, %s669_s20  }
  0xe9 PF: > { %p520_p2 = scmp.ge.s32.totalorder %s660_s30, 2  ;;  %s413_s21 = sand.u32 1, %s648_s28  }
  0xea   : > { %s414_s22 = scalar_lea.sflag [#allocation7], %s413_s21 }
  0xeb   : > { %p517_p3 = pnand %p520_p2, %p746_p7 }
  0xed   : > { %643 = dma.done.wait (!%p517_p3), %s414_s22, 2048  }
  0xee   : > { %645 = vsyncadd (!%p517_p3), %s414_s22, 4294965248  ;;  %p28_p4 = scmp.ge.s32.totalorder %s729_s7, 4   ;;  %s944_s28 = smov %s652_s29 }
  0xef   : > { %s945_s29 = smov %s656_s2  ;;  %s946_s2 = smov %s740_s10 }
  0xf0   : > { %s947_s30 = smov %s729_s7  ;;  %30 = sbr.rel (!%p28_p4) target bundleno = 38 (0x26), region = 69 }
  0xf7   :  { %419 = vsyncpa [#allocation7], 1 }
  0xf8   :  { %421 = vsyncpa [#allocation7 + $0x1], 1 }

</bundles_post_ra>
